<compile_context>
chip_gen: v5e
topology: v5e:2x2
jax: 0.10.0
libtpu: 0.0.40
codegen_flags: <defaults>
</compile_context>

<pallas_src>
import numpy as np
import jax
import jax.numpy as jnp
from jax.experimental import pallas as pl
from jax.experimental.pallas import tpu as pltpu


def _round_up(x, m):
    return ((x + m - 1) // m) * m


# ----------------------------------------------------------------------------
# Pallas kernel: fused  X @ W + b   (bf16 operands, fp32 accumulate)
# ----------------------------------------------------------------------------
def _linear_kernel(x_ref, w_ref, b_ref, o_ref):
    acc = jnp.dot(x_ref[...], w_ref[...], preferred_element_type=jnp.float32)
    acc = acc + b_ref[...]                 # (1, Np) broadcasts over the M tile
    o_ref[...] = acc.astype(o_ref.dtype)


def linear_pallas(x, w_padded, b_padded, out_features):
    """y = x @ w_padded + b_padded, sliced back to (M, out_features).

    x        : (M, K)  float32 activations.
    w_padded : (Kp, Np) bfloat16, already transposed + zero-padded at init.
    b_padded : (1, Np)  float32, zero-padded at init.
    """
    M, K = x.shape
    Kp, Np = w_padded.shape
    assert K <= Kp

    # Adaptive M tile: multiples of 16 (bf16 sublane packing), capped at 128.
    tile_m = min(128, _round_up(max(M, 8), 16))
    Mp = _round_up(M, tile_m)

    # Only per-call data prep: zero-pad the activations and cast to bf16
    # (halves HBM->VMEM bytes and runs the MXU on its fast bf16 path).
    xp = jnp.pad(x, ((0, Mp - M), (0, Kp - K))).astype(jnp.bfloat16)

    out = pl.pallas_call(
        _linear_kernel,
        out_shape=jax.ShapeDtypeStruct((Mp, Np), jnp.float32),
        grid_spec=pltpu.PrefetchScalarGridSpec(
            num_scalar_prefetch=0,
            grid=(Mp // tile_m,),
            in_specs=[
                pl.BlockSpec((tile_m, Kp), lambda i: (i, 0)),   # activations
                pl.BlockSpec((Kp, Np), lambda i: (0, 0)),       # weights (resident)
                pl.BlockSpec((1, Np), lambda i: (0, 0)),        # bias (resident)
            ],
            out_specs=pl.BlockSpec((tile_m, Np), lambda i: (i, 0)),
        ),
        compiler_params=pltpu.CompilerParams(
            dimension_semantics=("parallel",),
            vmem_limit_bytes=32 * 1024 * 1024,
        ),
    )(xp, w_padded, b_padded)
    return out[:M, :out_features]


# ----------------------------------------------------------------------------
# FC_classify parameters + forward, mirroring the PyTorch module
# ----------------------------------------------------------------------------
def init_fc_classify_params(key, in_shape, out_shape):
    """Mirrors FC_classify.__init__: a single nn.Linear(in_shape, out_shape)."""
    if isinstance(in_shape, (list, tuple)):
        if len(in_shape) > 1:
            raise ValueError("FC expecting flattened input")
        in_shape = in_shape[0]

    kw, kb = jax.random.split(key)
    bound = 1.0 / float(np.sqrt(in_shape))          # PyTorch default Linear init
    w = jax.random.uniform(kw, (out_shape, in_shape), jnp.float32, -bound, bound)
    b = jax.random.uniform(kb, (out_shape,), jnp.float32, -bound, bound)

    # Pre-transpose + pre-pad ONCE at init:
    #   K -> multiple of 16 only (full-K block; no padding K up to 128),
    #   N -> multiple of 128 for lane-dense MXU passes and unmasked stores.
    Kp = _round_up(in_shape, 16)
    Np = _round_up(out_shape, 128)
    w_padded = jnp.pad(w.T, ((0, Kp - in_shape), (0, Np - out_shape))
                       ).astype(jnp.bfloat16)
    b_padded = jnp.pad(b.reshape(1, out_shape), ((0, 0), (0, Np - out_shape)))

    return dict(w_padded=w_padded, b_padded=b_padded,
                w_f32=w, b_f32=b,
                in_features=in_shape, out_features=out_shape)


def fc_classify_forward(params, x):
    """forward(x) = squeeze(x @ W.T + b) — same semantics as the PyTorch module."""
    lead = x.shape[:-1]
    x2 = x.reshape(-1, params["in_features"]).astype(jnp.float32)
    y = linear_pallas(x2, params["w_padded"], params["b_padded"],
                      params["out_features"])
    y = y.reshape(*lead, params["out_features"])
    return jnp.squeeze(y)                 # matches PyTorch .squeeze()


if __name__ == "__main__":
    key = jax.random.PRNGKey(0)
    kx, kp = jax.random.split(key)

    batch, in_features, out_features = 2, 32, 10
    x = jax.random.normal(kx, (batch, in_features), dtype=jnp.float32)

    params = init_fc_classify_params(kp, [in_features], out_features)

    y = fc_classify_forward(params, x)
    y = jax.block_until_ready(y)

    assert y.shape == (batch, out_features), y.shape
    assert y.dtype == jnp.float32

    # Reference check (bf16 MXU operands, fp32 accumulation -> loose tolerance).
    y_ref = x @ params["w_f32"].T + params["b_f32"]
    np.testing.assert_allclose(np.asarray(y), np.asarray(y_ref),
                               rtol=5e-2, atol=5e-2)
    print("KERNEL_OK")
</pallas_src>

<mosaic_0001>
module attributes {stable_mosaic.version = 11 : i64} {
  func.func @_linear_kernel(%arg0: i32, %arg1: memref<16x32xbf16, #tpu.memory_space<vmem>>, %arg2: memref<32x128xbf16, #tpu.memory_space<vmem>>, %arg3: memref<1x128xf32, #tpu.memory_space<vmem>>, %arg4: memref<16x128xf32, #tpu.memory_space<vmem>>) attributes {dimension_semantics = [#tpu.dimension_semantics<parallel>], iteration_bounds = array<i64: 1>, scalar_prefetch = 0 : i64, scratch_operands = 0 : i64, tpu.core_type = #tpu.core_type<tc>, window_params = [{transform_indices = @transform_0, window_bounds = array<i64: 16, 32>}, {pipeline_mode = #tpu.pipeline_mode<synchronous>, transform_indices = @transform_1, window_bounds = array<i64: 32, 128>}, {pipeline_mode = #tpu.pipeline_mode<synchronous>, transform_indices = @transform_2, window_bounds = array<i64: 1, 128>}, {transform_indices = @transform_3, window_bounds = array<i64: 16, 128>}]} {
    %c0 = arith.constant 0 : index
    %c0_0 = arith.constant 0 : index
    %0 = vector.load %arg1[%c0, %c0_0] : memref<16x32xbf16, #tpu.memory_space<vmem>>, vector<16x32xbf16>
    %c0_1 = arith.constant 0 : index
    %c0_2 = arith.constant 0 : index
    %1 = vector.load %arg2[%c0_1, %c0_2] : memref<32x128xbf16, #tpu.memory_space<vmem>>, vector<32x128xbf16>
    %cst = arith.constant dense<0.000000e+00> : vector<16x128xf32>
    %2 = tpu.matmul %0, %1, %cst {dimension_numbers = #tpu.dot_dimension_numbers<[1], [0], [0], [1], [0, 0, 1, 1], [], []>} : vector<16x32xbf16>, vector<32x128xbf16>, vector<16x128xf32> -> vector<16x128xf32>
    %c0_3 = arith.constant 0 : index
    %c0_4 = arith.constant 0 : index
    %3 = vector.load %arg3[%c0_3, %c0_4] : memref<1x128xf32, #tpu.memory_space<vmem>>, vector<1x128xf32>
    %4 = vector.broadcast %3 : vector<1x128xf32> to vector<16x128xf32>
    %5 = arith.addf %2, %4 : vector<16x128xf32>
    %c0_5 = arith.constant 0 : index
    %c0_6 = arith.constant 0 : index
    %6 = vector.load %arg4[%c0_5, %c0_6] : memref<16x128xf32, #tpu.memory_space<vmem>>, vector<16x128xf32>
    tpu.vector_store %arg4[%c0_5, %c0_6], %5 {strides = array<i32>} : memref<16x128xf32, #tpu.memory_space<vmem>>, vector<16x128xf32>,
    return
  }
  func.func @transform_0(%arg0: i32) -> (i32, i32) {
    %c0_i32 = arith.constant 0 : i32
    %c0_i32_0 = arith.constant 0 : i32
    return %arg0, %c0_i32 : i32, i32
  }
  func.func @transform_1(%arg0: i32) -> (i32, i32) {
    %c0_i32 = arith.constant 0 : i32
    %c0_i32_0 = arith.constant 0 : i32
    %c0_i32_1 = arith.constant 0 : i32
    return %c0_i32, %c0_i32_0 : i32, i32
  }
  func.func @transform_2(%arg0: i32) -> (i32, i32) {
    %c0_i32 = arith.constant 0 : i32
    %c0_i32_0 = arith.constant 0 : i32
    %c0_i32_1 = arith.constant 0 : i32
    return %c0_i32, %c0_i32_0 : i32, i32
  }
  func.func @transform_3(%arg0: i32) -> (i32, i32) {
    %c0_i32 = arith.constant 0 : i32
    %c0_i32_0 = arith.constant 0 : i32
    return %arg0, %c0_i32 : i32, i32
  }
}

</mosaic_0001>

<bundles_post_ra>
// kernel: tpu_custom_call.1
= control target key start
LH: loop header
LB: loop body
LE: loop exit
PB: predicated region body
PF: predicated region fallthrough
CT: control target
= control target key end

     0   :  { %8 = vsyncpa [#allocation3], 0  ;;  %s256_s0 = inlined_call_operand.hbm [shape: bf16[16,32], index: 0, kind: input, shape index: {}]   ;;  %s257_s1 = inlined_call_operand.hbm [shape: bf16[32,128], index: 1, kind: input, shape index: {}]   ;;  %s258_s2 = inlined_call_operand.vmem [shape: f32[1,128], index: 2, kind: input, shape index: {}]   ;;  %s259_s3 = inlined_call_operand.hbm [shape: f32[16,128], index: 3, kind: output, shape index: {}]  }
   0x1   :  { %9 = vsyncpa [#allocation6], 0 }
   0x2   :  { %10 = vsyncpa [#allocation4], 0  ;;  %s15_s14 = sshll.u32 %s256_s0, 4  ;;  %s217_s15 = smov [#allocation2]   ;;  %s16_s14 = int_to_ptr.hbm [resolvable:$true] %s15_s14 }
   0x3   :  { %s17_s16 = sshll.u32 %s217_s15, 4  ;;  %s28_s19 = sshll.u32 %s257_s1, 4  ;;  %s18_s16 = int_to_ptr.vmem [resolvable:$true] %s17_s16  ;;  %s29_s19 = int_to_ptr.hbm [resolvable:$true] %s28_s19 }
   0x4   :  { %s218_s20 = smov 64   ;;  %s219_s21 = smov 4  }
   0x5   :  { %23 = dma.hbm_to_vmem [thread:$0]  %s16_s14, 128, %s18_s16, [#allocation3], %s218_s20, %s218_s20, %s219_s21  }
   0x6   :  { %s220_s22 = smov [#allocation5]  }
   0x7   :  { %s30_s23 = sshll.u32 %s220_s22, 4  ;;  %s31_s23 = int_to_ptr.vmem [resolvable:$true] %s30_s23 }
   0x8   :  { %36 = dma.hbm_to_vmem [thread:$0]  %s29_s19, 256, %s31_s23, [#allocation6], %s218_s20, %s218_s20, %s219_s21  }
   0x9   :  { %211 = dma.done.wait [#allocation3], 128  }
   0xa   :  { %212 = vsyncadd [#allocation3], 4294967168 }
   0xb   :  { %213 = dma.done.wait [#allocation6], 256  }
   0xc   :  { %214 = vsyncadd [#allocation6], 4294967040  ;;  %v130_v0 = vld [vmem:[#allocation5 + $0x8] sm:$0xff]  ;;  %v129_v1 = vld [vmem:[#allocation5] sm:$0xff]  ;;  %vm75_vm0 = vcmask 261120   ;;  %s221_s24 = smov [#allocation7]  }
   0xd   :  { %85 = vmatpush.bf16.msra.mxu0 %v130_v0  ;;  %v128_v2 = vld [vmem:[#allocation2] sm:$0xff]  ;;  %s99_s25 = sshll.u32 %s221_s24, 4  ;;  %s101_s28 = sshll.u32 %s259_s3, 4  ;;  %s100_s25 = int_to_ptr.vmem [resolvable:$true] %s99_s25  ;;  %s102_s28 = int_to_ptr.hbm [resolvable:$true] %s101_s28 }
   0xe   :  { %v138_v3 = vld [vmem:[%s258_s2] ss:$0 sm:$0xff]  ;;  %s222_s29 = smov 128   ;;  %s223_s30 = smov 8  }
  0x11   :  { %86 = vmatpush.bf16.msra.mxu0 %v129_v1 }
  0x14   :  { %127 = vmatmul.msk.bf16.vlgmr.msra.gmra.mxu0 %vm75_vm0, %v128_v2 }
  0x91   :  { %v88_v4 = vpop.f32.mrf.mxu0 }
  0x92   :  { %v89_v5 = vadd.f32 %v138_v3, %v88_v4 }
  0x94   :  { %93 = vst [vmem:[#allocation7] sm:$0xff] %v89_v5 }
  0x99   :  { %v90_v6 = vpop.f32.mrf.mxu0 }
  0x9a   :  { %v91_v7 = vadd.f32 %v138_v3, %v90_v6 }
  0x9c   :  { %94 = vst [vmem:[#allocation7 + $0x8] sm:$0xff] %v91_v7 }
  0x9d   :  { %107 = dma.vmem_to_hbm [thread:$0]  %s100_s25, 256, %s102_s28, [#allocation4], %s222_s29, %s222_s29, %s223_s30  }
  0x9e   :  { %215 = dma.done.wait [#allocation4], 256  }
  0x9f   :  { %216 = vsyncadd [#allocation4], 4294967040 }
  0xa0   :  { %112 = vsyncpa [#allocation3], 1 }
  0xa1   :  { %113 = vsyncpa [#allocation6], 1 }
  0xa2   :  { %114 = vsyncpa [#allocation4], 1 }

</bundles_post_ra>
